<compile_context>
chip_gen: v7x
topology: tpu7x:2x2x1
jax: 0.10.0
libtpu: 0.0.40
codegen_flags: <defaults>
</compile_context>

<pallas_src>
import jax
import jax.numpy as jnp
from jax import lax
from jax.experimental import pallas as pl
from jax.experimental.pallas import tpu as pltpu

_LANE = 128
_SUBLANE = 8


def _gcn_kernel(adj_ref, x_ref, w_ref, b_ref, out_ref):
    # adj_ref : (Np, Np)      pre-normalized adjacency (batch-invariant, kept
    #                         resident: its index_map is constant across the grid)
    # x_ref   : (Bt*Np, Din)  Bt batches of node features, rows collapsed
    # w_ref   : (Din, Dp)     weight, Dout zero-padded to lane-dense Dp (x128)
    # b_ref   : (1, Dp)       bias, f32
    # out_ref : (Bt*Np, Dp)
    n = adj_ref.shape[0]
    bt = x_ref.shape[0] // n

    adj_n = adj_ref[...]
    w = w_ref[...]
    bias = b_ref[...]                                   # f32

    # One fused feature transform for all Bt batches (fills the MXU M dim).
    xw = jnp.dot(x_ref[...], w,
                 preferred_element_type=jnp.float32)    # (Bt*Np, Dp) f32

    # Per-batch aggregation with the pre-normalized adjacency.  Bt is a static
    # Python int, so this unrolls with constant row offsets (Np is a multiple
    # of 8, so every slice is sublane-aligned).
    for i in range(bt):
        lo, hi = i * n, (i + 1) * n
        xw_i = xw[lo:hi, :]                             # f32 residual kept as-is
        agg = jnp.dot(adj_n, xw_i.astype(adj_n.dtype),
                      preferred_element_type=jnp.float32)
        o = agg + xw_i + bias
        # LeakyReLU(negative_slope=0.01): max(x, 0.01x) -> 2 VPU ops.
        out_ref[lo:hi, :] = jnp.maximum(o, 0.01 * o).astype(out_ref.dtype)


def _pick_batch_tile(B, Np, block_batches):
    if block_batches is not None:
        assert B % block_batches == 0
        return block_batches
    # Aim for ~256 rows per fused XW matmul (fills MXU M on v6e/v7x); pick the
    # largest divisor of B not exceeding that.  For large B this also leaves
    # B//Bt >= 2 grid steps so v7x's two TensorCores both get work.
    target = max(1, min(B, max(1, 256 // max(Np, 1))))
    for d in range(target, 0, -1):
        if B % d == 0:
            return d
    return 1


def graph_convolution(adj, X, W, b, *, compute_dtype=None, block_batches=None):
    """adj: (N, N), X: (B, N, Din), W: (Din, Dout), b: (Dout,) -> (B, N, Dout)."""
    B, N, Din = X.shape
    Dout = W.shape[1]
    out_dtype = X.dtype
    cdt = compute_dtype if compute_dtype is not None else X.dtype

    # ---- one-time, batch-invariant degree normalization (wrapper, not kernel) ----
    # Matches PyTorch: zero-degree rows still produce inf/NaN, as in the reference.
    adj_f32 = adj.astype(jnp.float32)
    deg = jnp.sum(adj_f32, axis=1, keepdims=True)       # (N, 1)
    dinv = lax.rsqrt(deg)                               # (N, 1)
    norm_adj = adj_f32 * dinv * dinv.T                  # (N, N), computed once

    # ---- padding: lane-dense Dout (x128) and sublane-friendly N (x8) ----
    Dp = ((Dout + _LANE - 1) // _LANE) * _LANE
    Np = ((N + _SUBLANE - 1) // _SUBLANE) * _SUBLANE

    norm_adj_p = jnp.pad(norm_adj, ((0, Np - N), (0, Np - N))).astype(cdt)
    X_p = jnp.pad(X, ((0, 0), (0, Np - N), (0, 0))).astype(cdt)
    X2 = X_p.reshape(B * Np, Din)                       # collapse batch into rows
    W_p = jnp.pad(W, ((0, 0), (0, Dp - Dout))).astype(cdt)
    b_p = jnp.pad(b.reshape(1, Dout), ((0, 0), (0, Dp - Dout))).astype(jnp.float32)

    Bt = _pick_batch_tile(B, Np, block_batches)
    grid = (B // Bt,)

    out2 = pl.pallas_call(
        _gcn_kernel,
        out_shape=jax.ShapeDtypeStruct((B * Np, Dp), out_dtype),
        grid_spec=pltpu.PrefetchScalarGridSpec(
            num_scalar_prefetch=0,
            grid=grid,
            in_specs=[
                pl.BlockSpec((Np, Np), lambda i: (0, 0)),          # norm_adj (resident)
                pl.BlockSpec((Bt * Np, Din), lambda i: (i, 0)),    # X rows for this tile
                pl.BlockSpec((Din, Dp), lambda i: (0, 0)),         # W (shared)
                pl.BlockSpec((1, Dp), lambda i: (0, 0)),           # b (shared, f32)
            ],
            out_specs=pl.BlockSpec((Bt * Np, Dp), lambda i: (i, 0)),
        ),
        compiler_params=pltpu.CompilerParams(
            dimension_semantics=("parallel",),
            vmem_limit_bytes=48 * 1024 * 1024,
        ),
    )(norm_adj_p, X2, W_p, b_p)

    # Strip padding: (B*Np, Dp) -> (B, N, Dout)
    return out2.reshape(B, Np, Dp)[:, :N, :Dout]


def _reference(adj, X, W, b):
    deg = jnp.sum(adj, axis=1, keepdims=True)
    norm_adj = adj / jnp.sqrt(deg) / jnp.sqrt(deg).T
    xw = X @ W
    out = jnp.einsum("nm,bmd->bnd", norm_adj, xw) + xw + b
    return jnp.where(out > 0, out, 0.01 * out)


if __name__ == "__main__":
    key = jax.random.PRNGKey(0)
    k_adj, k_x, k_w, k_b = jax.random.split(key, 4)

    B, N, Din, Dout = 2, 16, 8, 32

    # Positive adjacency so deg > 0 (typical GCN usage; sqrt well-defined).
    adj = jax.random.uniform(k_adj, (N, N), dtype=jnp.float32) + 0.1
    adj = 0.5 * (adj + adj.T)
    X = jax.random.normal(k_x, (B, N, Din), dtype=jnp.float32)
    W = jax.random.normal(k_w, (Din, Dout), dtype=jnp.float32)
    b = jax.random.normal(k_b, (Dout,), dtype=jnp.float32)

    ref = _reference(adj, X, W, b)

    # f32 compute path: tight tolerance against the reference.
    out = jax.block_until_ready(graph_convolution(adj, X, W, b))
    assert out.shape == (B, N, Dout)
    assert jnp.allclose(out, ref, atol=1e-4, rtol=1e-4)

    # bf16 MXU compute path (recommended for large N on v6e/v7x): f32 accumulate,
    # f32 residual/bias -> only input-rounding error, checked loosely.
    out_bf16 = jax.block_until_ready(
        graph_convolution(adj, X, W, b, compute_dtype=jnp.bfloat16))
    assert out_bf16.shape == (B, N, Dout)
    assert jnp.allclose(out_bf16, ref, atol=1e-1, rtol=1e-1)

    print("KERNEL_OK")
</pallas_src>

<mosaic_0001>
module attributes {stable_mosaic.version = 11 : i64} {
  func.func @_gcn_kernel(%arg0: i32, %arg1: memref<16x16xf32, #tpu.memory_space<vmem>>, %arg2: memref<32x8xf32, #tpu.memory_space<vmem>>, %arg3: memref<8x128xf32, #tpu.memory_space<vmem>>, %arg4: memref<1x128xf32, #tpu.memory_space<vmem>>, %arg5: memref<32x128xf32, #tpu.memory_space<vmem>>) attributes {dimension_semantics = [#tpu.dimension_semantics<parallel>], iteration_bounds = array<i64: 1>, scalar_prefetch = 0 : i64, scratch_operands = 0 : i64, tpu.core_type = #tpu.core_type<tc>, window_params = [{pipeline_mode = #tpu.pipeline_mode<synchronous>, transform_indices = @transform_0, window_bounds = array<i64: 16, 16>}, {transform_indices = @transform_1, window_bounds = array<i64: 32, 8>}, {pipeline_mode = #tpu.pipeline_mode<synchronous>, transform_indices = @transform_2, window_bounds = array<i64: 8, 128>}, {pipeline_mode = #tpu.pipeline_mode<synchronous>, transform_indices = @transform_3, window_bounds = array<i64: 1, 128>}, {transform_indices = @transform_4, window_bounds = array<i64: 32, 128>}]} {
    %c0 = arith.constant 0 : index
    %c0_0 = arith.constant 0 : index
    %0 = vector.load %arg1[%c0, %c0_0] : memref<16x16xf32, #tpu.memory_space<vmem>>, vector<16x16xf32>
    %c0_1 = arith.constant 0 : index
    %c0_2 = arith.constant 0 : index
    %1 = vector.load %arg3[%c0_1, %c0_2] : memref<8x128xf32, #tpu.memory_space<vmem>>, vector<8x128xf32>
    %c0_3 = arith.constant 0 : index
    %c0_4 = arith.constant 0 : index
    %2 = vector.load %arg4[%c0_3, %c0_4] : memref<1x128xf32, #tpu.memory_space<vmem>>, vector<1x128xf32>
    %c0_5 = arith.constant 0 : index
    %c0_6 = arith.constant 0 : index
    %3 = vector.load %arg2[%c0_5, %c0_6] : memref<32x8xf32, #tpu.memory_space<vmem>>, vector<32x8xf32>
    %cst = arith.constant dense<0.000000e+00> : vector<32x128xf32>
    %4 = tpu.matmul %3, %1, %cst {dimension_numbers = #tpu.dot_dimension_numbers<[1], [0], [0], [1], [0, 0, 1, 1], [], []>} : vector<32x8xf32>, vector<8x128xf32>, vector<32x128xf32> -> vector<32x128xf32>
    %5 = vector.extract_strided_slice %4 {offsets = [0, 0], sizes = [16, 128], strides = [1, 1]} : vector<32x128xf32> to vector<16x128xf32>
    %cst_7 = arith.constant dense<0.000000e+00> : vector<16x128xf32>
    %6 = tpu.matmul %0, %5, %cst_7 {dimension_numbers = #tpu.dot_dimension_numbers<[1], [0], [0], [1], [0, 0, 1, 1], [], []>} : vector<16x16xf32>, vector<16x128xf32>, vector<16x128xf32> -> vector<16x128xf32>
    %7 = arith.addf %6, %5 : vector<16x128xf32>
    %8 = vector.broadcast %2 : vector<1x128xf32> to vector<16x128xf32>
    %9 = arith.addf %7, %8 : vector<16x128xf32>
    %cst_8 = arith.constant 0.00999999977 : f32
    %10 = vector.broadcast %cst_8 : f32 to vector<16x128xf32>
    %11 = arith.mulf %10, %9 : vector<16x128xf32>
    %12 = arith.maximumf %9, %11 : vector<16x128xf32>
    %c0_9 = arith.constant 0 : index
    %c0_10 = arith.constant 0 : index
    %13 = vector.load %arg5[%c0_9, %c0_10] : memref<32x128xf32, #tpu.memory_space<vmem>>, vector<16x128xf32>
    tpu.vector_store %arg5[%c0_9, %c0_10], %12 {strides = array<i32>} : memref<32x128xf32, #tpu.memory_space<vmem>>, vector<16x128xf32>,
    %14 = vector.extract_strided_slice %4 {offsets = [16, 0], sizes = [16, 128], strides = [1, 1]} : vector<32x128xf32> to vector<16x128xf32>
    %cst_11 = arith.constant dense<0.000000e+00> : vector<16x128xf32>
    %15 = tpu.matmul %0, %14, %cst_11 {dimension_numbers = #tpu.dot_dimension_numbers<[1], [0], [0], [1], [0, 0, 1, 1], [], []>} : vector<16x16xf32>, vector<16x128xf32>, vector<16x128xf32> -> vector<16x128xf32>
    %16 = arith.addf %15, %14 : vector<16x128xf32>
    %17 = vector.broadcast %2 : vector<1x128xf32> to vector<16x128xf32>
    %18 = arith.addf %16, %17 : vector<16x128xf32>
    %cst_12 = arith.constant 0.00999999977 : f32
    %19 = vector.broadcast %cst_12 : f32 to vector<16x128xf32>
    %20 = arith.mulf %19, %18 : vector<16x128xf32>
    %21 = arith.maximumf %18, %20 : vector<16x128xf32>
    %c16 = arith.constant 16 : index
    %c0_13 = arith.constant 0 : index
    %22 = vector.load %arg5[%c16, %c0_13] : memref<32x128xf32, #tpu.memory_space<vmem>>, vector<16x128xf32>
    tpu.vector_store %arg5[%c16, %c0_13], %21 {strides = array<i32>} : memref<32x128xf32, #tpu.memory_space<vmem>>, vector<16x128xf32>,
    return
  }
  func.func @transform_0(%arg0: i32) -> (i32, i32) {
    %c0_i32 = arith.constant 0 : i32
    %c0_i32_0 = arith.constant 0 : i32
    %c0_i32_1 = arith.constant 0 : i32
    return %c0_i32, %c0_i32_0 : i32, i32
  }
  func.func @transform_1(%arg0: i32) -> (i32, i32) {
    %c0_i32 = arith.constant 0 : i32
    %c0_i32_0 = arith.constant 0 : i32
    return %arg0, %c0_i32 : i32, i32
  }
  func.func @transform_2(%arg0: i32) -> (i32, i32) {
    %c0_i32 = arith.constant 0 : i32
    %c0_i32_0 = arith.constant 0 : i32
    %c0_i32_1 = arith.constant 0 : i32
    return %c0_i32, %c0_i32_0 : i32, i32
  }
  func.func @transform_3(%arg0: i32) -> (i32, i32) {
    %c0_i32 = arith.constant 0 : i32
    %c0_i32_0 = arith.constant 0 : i32
    %c0_i32_1 = arith.constant 0 : i32
    return %c0_i32, %c0_i32_0 : i32, i32
  }
  func.func @transform_4(%arg0: i32) -> (i32, i32) {
    %c0_i32 = arith.constant 0 : i32
    %c0_i32_0 = arith.constant 0 : i32
    return %arg0, %c0_i32 : i32, i32
  }
}

</mosaic_0001>

<bundles_post_ra>
// kernel: tpu_custom_call.1
= control target key start
LH: loop header
LB: loop body
LE: loop exit
PB: predicated region body
PF: predicated region fallthrough
CT: control target
= control target key end

     0   :  { %vm26_vm0 = vcmask 64512   ;;  %s462_s0 = inlined_call_operand.vmem [shape: f32[16,16], index: 0, kind: input, shape index: {}]   ;;  %s463_s1 = inlined_call_operand.vmem [shape: f32[32,8], index: 1, kind: input, shape index: {}]   ;;  %s464_s2 = inlined_call_operand.vmem [shape: f32[8,128], index: 2, kind: input, shape index: {}]   ;;  %s465_s3 = inlined_call_operand.vmem [shape: f32[1,128], index: 3, kind: input, shape index: {}]   ;;  %s466_s4 = inlined_call_operand.hbm [shape: f32[32,128], index: 4, kind: output, shape index: {}]  }
   0x1   :  { %v20_v0 = vld [vmem:[%s464_s2] sm:$0xff]  ;;  %v23_v2 = vld [vmem:[%s463_s1 + $0x8] sm:$0xff]  ;;  %v24_v3 = vld [vmem:[%s463_s1 + $0x10] sm:$0xff] }
   0x2   :  { %v22_v1 = vld [vmem:[%s463_s1] sm:$0xff]  ;;  %341 = vmatprep.subr.mxu0 %v20_v0 }
   0x3   :  { %343 = vmatprep.mubr.msk.f32.mxu0 %vm26_vm0, %v22_v1 }
   0x4   :  { %9 = vsyncpa [#allocation3], 0  ;;  %342 = vmatpush3.msra.mxu0 %v20_v0  ;;  %v25_v4 = vld [vmem:[%s463_s1 + $0x18] sm:$0xff]  ;;  %v18_v5 = vld [vmem:[%s462_s0] sm:$0xff]  ;;  %vm124_vm1 = vcmask 130048  }
   0x5   :  { %344 = vmatmul.mubr.msk.f32.vlgmr.msra.gmra.mrb[0].mxu0 %vm26_vm0, %v23_v2  ;;  %353 = vmatprep.mubr.msk.f32.mxu1 %vm124_vm1, %v18_v5  ;;  %v19_v11 = vld [vmem:[%s462_s0 + $0x8] sm:$0xff]  ;;  %v325_v13 = vld [vmem:[%s465_s3] ss:$0 sm:$0xff]  ;;  %s398_s0 = smov [#allocation2]  }
   0x6   :  { %346 = vmatprep.mubr.msk.f32.mxu0 %vm26_vm0, %v24_v3  ;;  %s308_s29 = sshll.u32 %s398_s0, 4  ;;  %s309_s29 = int_to_ptr.vmem [resolvable:$true] %s308_s29 }
   0x7   :  { %s374_s3 = scalar_lea.vmem %s309_s29, 512  ;;  %p379_p1 = scmp.lt.s32.totalorder %s309_s29, %s309_s29 }
   0x8   :  { %p375_p0 = scmp.ne.s32.totalorder %s309_s29, %s374_s3  ;;  %p380_p2 = scmp.lt.s32.totalorder %s374_s3, %s374_s3 }
   0x9   :  { %347 = vmatmul.mubr.msk.f32.gmra.mrb[2].mxu0 %vm26_vm0, %v25_v4 }
   0xa   :  { %p381_p3 = por %p380_p2, %p379_p1 }
   0xc   :  { %p382_p4 = pnand %p381_p3, %p375_p0 }
  0xd8   :  { %v345_v6 = vpop.f32.mrb[0].mxu0 }
  0xd9   :  { %v105_v7 = vpop.f32.mrb[1].mxu0 }
  0xda   :  { %v363_v8 = vpack.c.bf16 %v345_v6, %v105_v7 }
  0xdc   :  { %v348_v9 = vpop.f32.mrb[2].mxu0  ;;  %364 = vmatprep.subr.bf16.mxu1 %v363_v8 }
  0xdd   :  { %v115_v10 = vpop.f32.mrb[3].mxu0  ;;  %366 = vmatpush3.bf16.msra.mxu1 %v363_v8 }
  0xde   :  { %v367_v12 = vpack.c.bf16 %v348_v9, %v115_v10 }
  0xe0   :  { %354 = vmatmul.mubr.msk.f32.vlgmr.msra.gmra.mrb[0].mxu1 %vm124_vm1, %v19_v11  ;;  %368 = vmatprep.subr.bf16.mxu1 %v367_v12 }
  0xe1   :  { %370 = vmatpush3.bf16.msra.mxu1 %v367_v12  ;;  %360 = vmatprep.mubr.msk.f32.mxu1 %vm124_vm1, %v18_v5 }
  0xe4   :  { %361 = vmatmul.mubr.msk.f32.vlgmr.msra.gmra.mrb[2].mxu1 %vm124_vm1, %v19_v11 }
 0x1b3   :  { %v355_v14 = vpop.f32.mrb[0].mxu1 }
 0x1b4   :  { %v203_v15 = vadd.f32 %v355_v14, %v345_v6  ;;  %v197_v16 = vpop.f32.mrb[1].mxu1 }
 0x1b5   :  { %v198_v17 = vadd.f32 %v197_v16, %v105_v7 }
 0x1b6   :  { %v213_v18 = vadd.f32 %v325_v13, %v203_v15 }
 0x1b7   :  { %v212_v19 = vadd.f32 %v325_v13, %v198_v17  ;;  %v362_v20 = vpop.f32.mrb[2].mxu1 }
 0x1b8   :  { %v215_v21 = vmul.f32 0.01, %v213_v18  ;;  %v292_v22 = vadd.f32 %v362_v20, %v348_v9  ;;  %v286_v23 = vpop.f32.mrb[3].mxu1 }
 0x1b9   :  { %v214_v24 = vmul.f32 0.01, %v212_v19  ;;  %v287_v25 = vadd.f32 %v286_v23, %v115_v10 }
 0x1ba   :  { %v217_v26 = vmax.f32 %v213_v18, %v215_v21  ;;  %v296_v27 = vadd.f32 %v325_v13, %v292_v22 }
 0x1bb   :  { %v216_v28 = vmax.f32 %v212_v19, %v214_v24  ;;  %v295_v29 = vadd.f32 %v325_v13, %v287_v25 }
 0x1bc   :  { %219 = vst [vmem:[#allocation2 + $0x8] sm:$0xff] %v217_v26  ;;  %v298_v30 = vmul.f32 0.01, %v296_v27 }
 0x1bd   :  { %218 = vst [vmem:[#allocation2] sm:$0xff] %v216_v28  ;;  %v297_v31 = vmul.f32 0.01, %v295_v29 }
 0x1be   :  { %v300_v32 = vmax.f32 %v296_v27, %v298_v30 }
 0x1bf   :  { %v299_v33 = vmax.f32 %v295_v29, %v297_v31 }
 0x1c0   :  { %302 = vst [vmem:[#allocation2 + $0x18] sm:$0xff] %v300_v32 }
 0x1c1   :  { %301 = vst [vmem:[#allocation2 + $0x10] sm:$0xff] %v299_v33 }
 0x1c2   :  { %385 = shalt.err (!%p382_p4)
}
 0x1c3   :  { %s386_s6 = scalar_lea.hbm %s466_s4, 512 }
 0x1c4   :  { %p387_p5 = scmp.ne.s32.totalorder %s466_s4, %s386_s6  ;;  %p390_p6 = scmp.lt.u32.totalorder %s386_s6, %s466_s4 }
 0x1c6   :  { %p392_p7 = pnand %p390_p6, %p387_p5 }
 0x1c8   :  { %395 = shalt.err (!%p392_p7)
}
 0x1c9   :  { %s399_s11 = smov 128   ;;  %s400_s12 = smov 8  }
 0x1ca   :  { %314 = dma.vmem_to_hbm [thread:$0]  %s309_s29, 512, %s466_s4, [#allocation3], %s399_s11, %s399_s11, %s400_s12  }
 0x1cb   :  { %396 = dma.done.wait [#allocation3], 512  }
 0x1cc   :  { %397 = vsyncadd [#allocation3], 4294966784 }
 0x1cd   :  { %318 = vsyncpa [#allocation3], 1 }

</bundles_post_ra>
